<compile_context>
chip_gen: v7x
topology: tpu7x:2x2x1
jax: 0.10.0
libtpu: 0.0.40
codegen_flags: <defaults>
</compile_context>

<pallas_src>
import functools
import numpy as np
import jax
import jax.numpy as jnp
from jax.experimental import pallas as pl
from jax.experimental.pallas import tpu as pltpu

LOG2 = float(np.log(2.0))
VMEM_LIMIT = 32 * 1024 * 1024


# ----------------------------- helpers -----------------------------

def _round_up(n, m):
    return ((n + m - 1) // m) * m


def _padded_rows(n):
    # small row counts -> sublane multiple; large -> 256-row tiles
    return _round_up(n, 8) if n <= 256 else _round_up(n, 256)


def _row_tile(rows):
    return rows if rows <= 256 else 256


def _pad_rows_1d(x, rows, fill=0):
    pad = rows - x.shape[0]
    return x if pad == 0 else jnp.pad(x, (0, pad), constant_values=fill)


def _pad_rows_2d(x, rows):
    pad = rows - x.shape[0]
    return x if pad == 0 else jnp.pad(x, ((0, pad), (0, 0)))


def _apply_act(y, act):
    if act == 'silu':
        return y * jax.nn.sigmoid(y)
    if act == 'ssp':  # shifted softplus (SchNet-style InteractionBlock activation)
        return jnp.logaddexp(y, 0.0) - LOG2
    return y


# ----------------------------- fused linear-chain kernel -----------------------------
# Computes  y = actN(...act1(act0(x W0 + b0) [*mul]) W1 + b1 ...) [+ residual] [+ x]
# All matmuls run in one kernel invocation; operands are cast to bf16 for the MXU with
# f32 accumulation.  Epilogue multiply / residual add are fused VPU work.

def _fused_linear_kernel(*refs, acts, mul_stage, has_mul, has_res, res_from_x):
    n = len(acts)
    x_ref = refs[0]
    o_ref = refs[-1]
    extra = 1 + 2 * n
    mul_ref = refs[extra] if has_mul else None
    if has_res:
        res_ref = refs[extra + 1] if has_mul else refs[extra]
    else:
        res_ref = None

    x = x_ref[...]                       # f32
    y = x
    for s in range(n):
        w = refs[1 + 2 * s][...]         # bf16
        b = refs[2 + 2 * s][...]         # f32 (1, N)
        y = jnp.dot(y.astype(jnp.bfloat16), w,
                    preferred_element_type=jnp.float32) + b
        y = _apply_act(y, acts[s])
        if has_mul and s == mul_stage:
            y = y * mul_ref[...]
    if has_res:
        y = y + res_ref[...]
    if res_from_x:
        y = y + x
    o_ref[...] = y


@functools.partial(jax.jit, static_argnames=('acts', 'mul_stage', 'res_from_x'))
def _fused_linear(x, ws, bs_, mul, res, *, acts, mul_stage, res_from_x):
    M, K = x.shape
    N = ws[-1].shape[1]
    Mp = _padded_rows(M)
    TM = _row_tile(Mp)

    xp = x if Mp == M else _pad_rows_2d(x, Mp)
    args = [xp]
    in_specs = [pl.BlockSpec((TM, K), lambda i: (i, 0))]
    for w, b in zip(ws, bs_):
        args += [w, b]
        in_specs += [pl.BlockSpec(w.shape, lambda i: (0, 0)),
                     pl.BlockSpec(b.shape, lambda i: (0, 0))]
    if mul is not None:
        mp = mul if Mp == M else _pad_rows_2d(mul, Mp)
        args.append(mp)
        in_specs.append(pl.BlockSpec((TM, mul.shape[1]), lambda i: (i, 0)))
    if res is not None:
        rp = res if Mp == M else _pad_rows_2d(res, Mp)
        args.append(rp)
        in_specs.append(pl.BlockSpec((TM, N), lambda i: (i, 0)))

    out = pl.pallas_call(
        functools.partial(_fused_linear_kernel, acts=acts, mul_stage=mul_stage,
                          has_mul=mul is not None, has_res=res is not None,
                          res_from_x=res_from_x),
        out_shape=jax.ShapeDtypeStruct((Mp, N), jnp.float32),
        grid=(Mp // TM,),
        in_specs=in_specs,
        out_specs=pl.BlockSpec((TM, N), lambda i: (i, 0)),
        compiler_params=pltpu.CompilerParams(
            dimension_semantics=("parallel",),
            vmem_limit_bytes=VMEM_LIMIT),
    )(*args)
    return out if Mp == M else out[:M]


def pallas_linear_chain(x, layers, acts=None, mul=None, mul_stage=None,
                        residual=None, res_from_x=False):
    ws = tuple(w for w, _ in layers)
    bs_ = tuple(b for _, b in layers)
    if acts is None:
        acts = ('none',) * len(layers)
    if mul_stage is None:
        mul_stage = len(layers) - 1
    return _fused_linear(
        x.astype(jnp.float32), ws, bs_,
        None if mul is None else mul.astype(jnp.float32),
        None if residual is None else residual.astype(jnp.float32),
        acts=tuple(acts), mul_stage=int(mul_stage), res_from_x=bool(res_from_x))


def pallas_linear(x, layer, act='none', mul=None, residual=None):
    return pallas_linear_chain(x, [layer], acts=(act,), mul=mul, residual=residual)


# ----------------------------- LayerNorm kernel -----------------------------

def _layernorm_kernel(x_ref, g_ref, b_ref, o_ref):
    x = x_ref[...]
    mu = jnp.mean(x, axis=-1, keepdims=True)
    var = jnp.mean((x - mu) ** 2, axis=-1, keepdims=True)
    o_ref[...] = (x - mu) * jax.lax.rsqrt(var + 1e-5) * g_ref[...] + b_ref[...]


@jax.jit
def _pallas_layernorm(x, gamma, beta):
    M, H = x.shape
    Mp = _padded_rows(M)
    TM = _row_tile(Mp)
    xp = x if Mp == M else _pad_rows_2d(x, Mp)
    out = pl.pallas_call(
        _layernorm_kernel,
        out_shape=jax.ShapeDtypeStruct((Mp, H), jnp.float32),
        grid=(Mp // TM,),
        in_specs=[pl.BlockSpec((TM, H), lambda i: (i, 0)),
                  pl.BlockSpec((1, H), lambda i: (0, 0)),
                  pl.BlockSpec((1, H), lambda i: (0, 0))],
        out_specs=pl.BlockSpec((TM, H), lambda i: (i, 0)),
        compiler_params=pltpu.CompilerParams(
            dimension_semantics=("parallel",),
            vmem_limit_bytes=VMEM_LIMIT),
    )(xp, gamma, beta)
    return out if Mp == M else out[:M]


def pallas_layernorm(x, gb):
    g, b = gb
    return _pallas_layernorm(x.astype(jnp.float32), g, b)


# ----------------------------- segment-sum (scatter-add) kernel -----------------------------
# out[d] = sum_e [index[e] == d] * src[e] (* mul[e]).  One-hot tile is generated in-register
# from the index vector (never written to HBM); reduction over the source axis is tiled with
# an f32 accumulator (bounded VMEM, MXU matmul).

def _scatter_kernel(*refs, tile_rows, has_mul):
    idx_ref = refs[0]
    src_ref = refs[1]
    mul_ref = refs[2] if has_mul else None
    o_ref = refs[3] if has_mul else refs[2]
    acc_ref = refs[-1]

    e_step = pl.program_id(1)

    @pl.when(e_step == 0)
    def _():
        acc_ref[...] = jnp.zeros_like(acc_ref)

    idx = idx_ref[...]                                   # (1, TE) int32
    row0 = pl.program_id(0) * tile_rows
    rows = row0 + jax.lax.broadcasted_iota(jnp.int32, (tile_rows, idx.shape[1]), 0)
    onehot = (rows == idx).astype(jnp.bfloat16)          # (TD, TE)

    src = src_ref[...]
    if has_mul:
        src = src * mul_ref[...]
    acc_ref[...] += jnp.dot(onehot, src.astype(jnp.bfloat16),
                            preferred_element_type=jnp.float32)

    @pl.when(e_step == pl.num_programs(1) - 1)
    def _():
        o_ref[...] = acc_ref[...]


@functools.partial(jax.jit, static_argnames=('dim_size',))
def _scatter_add_impl(src, index, mul, *, dim_size):
    E, H = src.shape
    Ep = _padded_rows(E)
    if Ep != E:
        src = _pad_rows_2d(src, Ep)
        index = _pad_rows_1d(index, Ep, dim_size)        # sentinel -> dropped
        if mul is not None:
            mul = _pad_rows_2d(mul, Ep)
    Dp = _round_up(dim_size, 8) if dim_size <= 256 else _round_up(dim_size, 256)
    TE = _row_tile(Ep)
    TD = _row_tile(Dp)

    idx2 = index.reshape(1, Ep).astype(jnp.int32)
    args = [idx2, src]
    in_specs = [pl.BlockSpec((1, TE), lambda o, e: (0, e)),
                pl.BlockSpec((TE, H), lambda o, e: (e, 0))]
    if mul is not None:
        args.append(mul)
        in_specs.append(pl.BlockSpec((TE, H), lambda o, e: (e, 0)))

    out = pl.pallas_call(
        functools.partial(_scatter_kernel, tile_rows=TD, has_mul=mul is not None),
        out_shape=jax.ShapeDtypeStruct((Dp, H), jnp.float32),
        grid=(Dp // TD, Ep // TE),
        in_specs=in_specs,
        out_specs=pl.BlockSpec((TD, H), lambda o, e: (o, 0)),
        scratch_shapes=[pltpu.VMEM((TD, H), jnp.float32)],
        compiler_params=pltpu.CompilerParams(
            dimension_semantics=("parallel", "arbitrary"),
            vmem_limit_bytes=VMEM_LIMIT),
    )(*args)
    return out if Dp == dim_size else out[:dim_size]


def pallas_scatter_add(src, index, dim_size, mul=None):
    return _scatter_add_impl(
        src.astype(jnp.float32), index.astype(jnp.int32),
        None if mul is None else mul.astype(jnp.float32), dim_size=int(dim_size))


def pallas_scatter_mean(src, index, dim_size):
    s = pallas_scatter_add(src, index, dim_size)
    ones = jnp.ones((src.shape[0], 1), jnp.float32)
    cnt = pallas_scatter_add(ones, index, dim_size)
    return s / jnp.maximum(cnt, 1.0)


# ----------------------------- attention kernel -----------------------------

def _attn_kernel(q_ref, k_ref, v_ref, o_ref, *, scale):
    q = q_ref[...]
    k = k_ref[...]
    v = v_ref[...]
    s = jnp.einsum('bqd,bkd->bqk', q, k, preferred_element_type=jnp.float32) * scale
    m = jnp.max(s, axis=-1, keepdims=True)
    p = jnp.exp(s - m)
    denom = jnp.sum(p, axis=-1, keepdims=True)
    p = p * pl.reciprocal(denom, approx=True)
    o_ref[...] = jnp.einsum('bqk,bkd->bqd', p.astype(v.dtype), v,
                            preferred_element_type=jnp.float32)


@jax.jit
def _pallas_attention(q, k, v):
    BH, G, hd = q.shape
    scale = 1.0 / float(np.sqrt(hd))
    return pl.pallas_call(
        functools.partial(_attn_kernel, scale=scale),
        out_shape=jax.ShapeDtypeStruct((BH, G, hd), jnp.float32),
        grid=(1,),
        in_specs=[pl.BlockSpec((BH, G, hd), lambda i: (0, 0, 0)) for _ in range(3)],
        out_specs=pl.BlockSpec((BH, G, hd), lambda i: (0, 0, 0)),
        compiler_params=pltpu.CompilerParams(
            dimension_semantics=("arbitrary",),
            vmem_limit_bytes=VMEM_LIMIT),
    )(q, k, v)


# ----------------------------- parameter init -----------------------------

class KeyGen:
    def __init__(self, key):
        self._key = key

    def __call__(self):
        self._key, sub = jax.random.split(self._key)
        return sub


def glorot(kg, fan_in, fan_out, scale=2.0):
    # TODO(synk): glorot_orthogonal approximated with a scaled glorot-normal init.
    std = float(np.sqrt(scale * 2.0 / (fan_in + fan_out)))
    return jax.random.normal(kg(), (fan_in, fan_out), jnp.float32) * std


def lin_init(kg, fan_in, fan_out, bias=True):
    w = glorot(kg, fan_in, fan_out).astype(jnp.bfloat16)      # bf16 MXU operand
    b = jnp.zeros((1, fan_out), jnp.float32)                  # zero bias when bias=False
    return (w, b)


def ln_init(H):
    return (jnp.ones((1, H), jnp.float32), jnp.zeros((1, H), jnp.float32))


def init_interaction_pp(kg, H, IE, BE, NS, NR, nbs, nas):
    return {
        'lin_rbf1': lin_init(kg, NR, BE, bias=False),
        'lin_rbf2': lin_init(kg, BE, H, bias=False),
        'lin_sbf1': lin_init(kg, NS * NR, BE, bias=False),
        'lin_sbf2': lin_init(kg, BE, IE, bias=False),
        'lin_kj': lin_init(kg, H, H),
        'lin_ji': lin_init(kg, H, H),
        'lin_down': lin_init(kg, H, IE, bias=False),
        'lin_up': lin_init(kg, IE, H, bias=False),
        'before': [[lin_init(kg, H, H), lin_init(kg, H, H)] for _ in range(nbs)],
        'lin': lin_init(kg, H, H),
        'after': [[lin_init(kg, H, H), lin_init(kg, H, H)] for _ in range(nas)],
    }


def init_interaction_block(kg, H, num_rbf, num_filters):
    # TODO(synk): exact InteractionBlock source not provided; SchNet-style CFConv block used.
    return {
        'mlp1': lin_init(kg, num_rbf, num_filters),
        'mlp2': lin_init(kg, num_filters, num_filters),
        'lin1': lin_init(kg, H, num_filters, bias=False),
        'lin2': lin_init(kg, num_filters, H),
        'lin': lin_init(kg, H, H),
    }


def init_mha(kg, H):
    # TODO(synk): exact MultiheadAttention source not provided; standard QKV self-attention used.
    return {'qkv': lin_init(kg, H, 3 * H), 'o': lin_init(kg, H, H)}


def init_sl_block(kg, cfg):
    H = cfg['hidden']
    return {
        'short_mp': init_interaction_pp(kg, H, cfg['int_emb'], cfg['basis_emb'],
                                        cfg['num_spherical'], cfg['num_radial'],
                                        cfg['num_before_skip'], cfg['num_after_skip']),
        'a2m_mp': init_interaction_block(kg, H, cfg['num_rbf'], cfg['num_filters']),
        'm2a_mp': init_interaction_block(kg, H, cfg['num_rbf'], cfg['num_filters']),
        'long_mp': init_mha(kg, H),
        'lin_rbf': lin_init(kg, cfg['num_radial'], H, bias=False),
        'a2m_ln': ln_init(H),
        'm2a_ln': ln_init(H),
        'short_ln': ln_init(H),
        'long_ln': ln_init(H),
        'm2a_combine': lin_init(kg, 2 * H, H),
    }


def init_scalar(kg, H):
    # TODO(synk): exact `Scalar` output head not provided; 2-layer SiLU MLP -> scalar used.
    return {'l1': lin_init(kg, H, H // 2), 'l2': lin_init(kg, H // 2, 1)}


def init_model(kg, cfg):
    H, NR = cfg['hidden'], cfg['num_radial']
    sqrt3 = float(np.sqrt(3.0))
    return {
        'rbf_freq': jnp.pi * jnp.arange(1, NR + 1, dtype=jnp.float32),
        'emb_table': jax.random.uniform(kg(), (cfg['max_z'], H), jnp.float32,
                                        minval=-sqrt3, maxval=sqrt3),
        'emb_lin_rbf': lin_init(kg, NR, H),
        'emb_lin': lin_init(kg, 3 * H, H),
        'blocks': [init_sl_block(kg, cfg) for _ in range(cfg['num_layers'])],
        'out_a_ln': ln_init(H),
        'out_m_ln': ln_init(H),
        'out_rbf': lin_init(kg, NR, H, bias=False),
        'a_output': init_scalar(kg, H),
        'm_output': init_scalar(kg, H),
    }


# ----------------------------- basis functions (glue) -----------------------------

def envelope(x, exponent):
    p = exponent + 1
    a = -(p + 1) * (p + 2) / 2.0
    b = p * (p + 2)
    c = -p * (p + 1) / 2.0
    xs = jnp.where(x > 0, x, 1.0)                      # guard d == 0 (padded / degenerate edges)
    xp0 = xs ** (p - 1)
    val = 1.0 / xs + a * xp0 + b * xp0 * xs + c * xp0 * xs * xs
    return jnp.where((x < 1.0) & (x > 0), val, 0.0)


def bessel_rbf(dist, freq, cutoff, env_exp):
    d = dist[:, None] / cutoff
    return envelope(d, env_exp) * jnp.sin(freq[None, :] * d)


def spherical_sbf(dist, angle, idx_kj, num_spherical, num_radial, cutoff, env_exp):
    # TODO(synk): exact sympy-generated spherical Bessel / spherical harmonics of
    # SphericalBasisLayer not reproduced; Bessel-radial x cos(k*angle) basis with same shape.
    d = dist[:, None] / cutoff
    n = jnp.arange(1, num_radial + 1, dtype=jnp.float32)
    rad = envelope(d, env_exp) * jnp.sin(jnp.pi * n[None, :] * d)      # (E, NR)
    rad = rad[idx_kj]                                                  # (T, NR)
    k = jnp.arange(num_spherical, dtype=jnp.float32)
    ang = jnp.cos(k[None, :] * angle[:, None])                         # (T, NS)
    return (ang[:, :, None] * rad[:, None, :]).reshape(angle.shape[0],
                                                       num_spherical * num_radial)


def gaussian_smearing(dist, start, stop, num):
    offset = jnp.linspace(start, stop, num)
    coeff = -0.5 / float((stop - start) / (num - 1)) ** 2
    return jnp.exp(coeff * (dist[:, None] - offset[None, :]) ** 2)


# ----------------------------- module forwards -----------------------------

def interaction_pp(p, x, rbf, sbf, idx_kj, idx_ji_s):
    x_ji = pallas_linear(x, p['lin_ji'], 'silu')
    rbf_h = pallas_linear_chain(rbf, [p['lin_rbf1'], p['lin_rbf2']])            # (E, H)
    # act(lin_down( act(lin_kj(x)) * rbf_h )) fused in one kernel
    x_kj = pallas_linear_chain(x, [p['lin_kj'], p['lin_down']],
                               acts=('silu', 'silu'), mul=rbf_h, mul_stage=0)   # (E, IE)
    sbf_h = pallas_linear_chain(sbf, [p['lin_sbf1'], p['lin_sbf2']])            # (T, IE)
    x_kj_g = x_kj[idx_kj]                                                       # gather (glue)
    # (x_kj[idx_kj] * sbf_h) scattered over edges, multiply fused into the scatter kernel
    x_kj = pallas_scatter_add(x_kj_g, idx_ji_s, x.shape[0], mul=sbf_h)          # (E, IE)
    h = pallas_linear(x_kj, p['lin_up'], 'silu', residual=x_ji)                 # x_ji + act(lin_up)
    for rl in p['before']:
        h = pallas_linear_chain(h, rl, acts=('silu', 'silu'), res_from_x=True)
    h = pallas_linear(h, p['lin'], 'silu', residual=x)
    for rl in p['after']:
        h = pallas_linear_chain(h, rl, acts=('silu', 'silu'), res_from_x=True)
    return h


def interaction_block(p, x, gather_idx, scatter_idx, edge_weight, edge_attr,
                      dim_size, cutoff):
    C = 0.5 * (jnp.cos(edge_weight * jnp.pi / cutoff) + 1.0) * \
        (edge_weight < cutoff).astype(jnp.float32)
    # mlp2(ssp(mlp1(attr))) * C fused in one kernel (C broadcast over lanes)
    W = pallas_linear_chain(edge_attr, [p['mlp1'], p['mlp2']],
                            acts=('ssp', 'none'), mul=C[:, None])
    xj = pallas_linear(x, p['lin1'])[gather_idx]
    agg = pallas_scatter_add(xj, scatter_idx, dim_size, mul=W)   # xj*W fused into scatter
    h = pallas_linear(agg, p['lin2'], 'ssp')
    return pallas_linear(h, p['lin'])


def mha_forward(p, x2d, B, G, num_heads):
    H = x2d.shape[1]
    hd = H // num_heads
    qkv = pallas_linear(x2d, p['qkv'])                                 # fused (H, 3H) matmul
    qkv = qkv.reshape(B, G, 3, num_heads, hd).transpose(2, 0, 3, 1, 4)  # (3, B, nh, G, hd)
    q = qkv[0].reshape(B * num_heads, G, hd).astype(jnp.bfloat16)
    k = qkv[1].reshape(B * num_heads, G, hd).astype(jnp.bfloat16)
    v = qkv[2].reshape(B * num_heads, G, hd).astype(jnp.bfloat16)
    o = _pallas_attention(q, k, v)                                      # single grid step
    o = o.reshape(B, num_heads, G, hd).transpose(0, 2, 1, 3).reshape(B * G, H)
    return pallas_linear(o, p['o'])


def sl_block(p, cfg, x, rbf, sbf, m_x, g, bs):
    H = cfg['hidden']
    Gtot = cfg['total_grids']
    delta_m_x = m_x
    delta_x = x
    xs = pallas_layernorm(x, p['short_ln'])
    xs = interaction_pp(p['short_mp'], xs, rbf, sbf, g['idx_kj'], g['idx_ji_s'])
    a_x = pallas_linear(rbf, p['lin_rbf'], mul=xs)                   # lin_rbf(rbf)*x fused
    a_x = pallas_scatter_add(a_x, g['i_s'], g['Np'])
    m_xn = pallas_layernorm(m_x, p['long_ln'])
    m_xn = mha_forward(p['long_mp'], m_xn, bs, Gtot, cfg['num_heads'])
    a2m_msg = interaction_block(p['a2m_mp'], a_x, g['a2m_a_g'], g['a2m_m_s'],
                                g['a2m_w'], g['a2m_attr'], g['M'], cfg['grid_cutoff'])
    a2m_msg = pallas_layernorm(a2m_msg, p['a2m_ln'])
    m2a_msg = interaction_block(p['m2a_mp'], m_xn, g['a2m_m_g'], g['a2m_a_s'],
                                g['m2a_w'], g['m2a_attr'], g['Np'], cfg['grid_cutoff'])
    m2a_j = m2a_msg[g['j']]
    m2a_i = m2a_msg[g['i_g']]
    m2a_msg = pallas_linear(jnp.concatenate([m2a_j, m2a_i], axis=-1),
                            p['m2a_combine'], 'silu')
    m2a_msg = pallas_layernorm(m2a_msg, p['m2a_ln'])
    return delta_x + xs + m2a_msg, m_xn + a2m_msg + delta_m_x


def embedding_block(params, z, rbf, i, j):
    x = params['emb_table'][z]
    rbf_h = pallas_linear(rbf, params['emb_lin_rbf'], 'silu')
    return pallas_linear(jnp.concatenate([x[i], x[j], rbf_h], axis=-1),
                         params['emb_lin'], 'silu')


def scalar_forward(p, x):
    return pallas_linear_chain(x, [p['l1'], p['l2']], acts=('silu', 'none'))


def model_forward(params, cfg, z, a_pos, m_pos, batch,
                  a2a_ei, a2m_ei, idx_i, idx_j, idx_k, idx_kj, idx_ji, bs):
    cutoff, grid_cutoff = cfg['cutoff'], cfg['grid_cutoff']

    # ---- pad row counts once at model entry; scatter indices of padded rows -> sentinel ----
    N = z.shape[0]
    E = a2a_ei.shape[1]
    T = idx_kj.shape[0]
    A2M = a2m_ei.shape[1]
    Np, Ep, Tp, Ap = (_padded_rows(N), _padded_rows(E), _padded_rows(T), _padded_rows(A2M))
    Mcells = bs * cfg['total_grids']               # mesh count fixed by MHA reshape

    z = _pad_rows_1d(z, Np, 0)
    a_pos = _pad_rows_2d(a_pos, Np)
    batch_s = _pad_rows_1d(batch, Np, bs)          # out-of-range -> dropped in scatter kernel
    j = _pad_rows_1d(a2a_ei[0], Ep, 0)
    i_g = _pad_rows_1d(a2a_ei[1], Ep, 0)
    i_s = _pad_rows_1d(a2a_ei[1], Ep, Np)
    idx_i = _pad_rows_1d(idx_i, Tp, 0)
    idx_j = _pad_rows_1d(idx_j, Tp, 0)
    idx_k = _pad_rows_1d(idx_k, Tp, 0)
    idx_kj = _pad_rows_1d(idx_kj, Tp, 0)
    idx_ji_s = _pad_rows_1d(idx_ji, Tp, Ep)
    a2m_a_g = _pad_rows_1d(a2m_ei[0], Ap, 0)
    a2m_a_s = _pad_rows_1d(a2m_ei[0], Ap, Np)
    a2m_m_g = _pad_rows_1d(a2m_ei[1], Ap, 0)
    a2m_m_s = _pad_rows_1d(a2m_ei[1], Ap, Mcells)

    # ---- distances / basis (glue) ----
    a2a_w = jnp.linalg.norm(a_pos[j] - a_pos[i_g], axis=-1)
    a2m_w = jnp.linalg.norm(a_pos[a2m_a_g] - m_pos[a2m_m_g], axis=-1)
    m2a_w = a2m_w
    a2m_attr = gaussian_smearing(a2m_w, 0.0, grid_cutoff, cfg['num_rbf'])
    m2a_attr = gaussian_smearing(m2a_w, 0.0, grid_cutoff, cfg['num_rbf'])

    pos_i = a_pos[idx_i]
    pos_jj = a_pos[idx_j]
    pos_ji = a_pos[idx_j] - pos_i
    pos_kj = a_pos[idx_k] - pos_jj
    a = jnp.sum(pos_ji * pos_kj, axis=-1)
    b = jnp.linalg.norm(jnp.cross(pos_ji, pos_kj), axis=-1)
    angle = jnp.arctan2(b, a)

    rbf = bessel_rbf(a2a_w, params['rbf_freq'], cutoff, cfg['env_exp'])
    sbf = spherical_sbf(a2a_w, angle, idx_kj, cfg['num_spherical'], cfg['num_radial'],
                        cutoff, cfg['env_exp'])
    x = embedding_block(params, z, rbf, i_g, j)

    a_emb = params['emb_table'][z]
    m_x = pallas_scatter_mean(a_emb[a2m_a_g], a2m_m_s, Mcells)

    g = dict(j=j, i_g=i_g, i_s=i_s, idx_kj=idx_kj, idx_ji_s=idx_ji_s,
             a2m_a_g=a2m_a_g, a2m_a_s=a2m_a_s, a2m_m_g=a2m_m_g, a2m_m_s=a2m_m_s,
             a2m_w=a2m_w, m2a_w=m2a_w, a2m_attr=a2m_attr, m2a_attr=m2a_attr,
             Np=Np, M=Mcells)

    for blk in params['blocks']:
        x, m_x = sl_block(blk, cfg, x, rbf, sbf, m_x, g, bs)

    xo = pallas_linear(rbf, params['out_rbf'],
                       mul=pallas_layernorm(x, params['out_a_ln']))
    a_x = pallas_scatter_add(xo, i_s, Np)
    P_a = scalar_forward(params['a_output'], a_x)
    P_m = scalar_forward(params['m_output'], pallas_layernorm(m_x, params['out_m_ln']))
    energy_a = pallas_scatter_add(P_a, batch_s, bs)
    mesh_batch = jnp.repeat(jnp.arange(bs, dtype=jnp.int32), cfg['total_grids'])
    energy_m = pallas_scatter_add(P_m, mesh_batch, bs)
    return energy_a + energy_m


# ----------------------------- synthetic data / main -----------------------------

if __name__ == "__main__":
    cfg = dict(hidden=32, num_radial=8, num_spherical=4, int_emb=16, basis_emb=8,
               num_before_skip=1, num_after_skip=1, num_rbf=8, num_filters=16,
               num_grids=(2, 2, 2), num_heads=8, num_layers=2, max_z=20,
               cutoff=5.0, grid_cutoff=5.0, env_exp=5)
    cfg['total_grids'] = int(np.prod(cfg['num_grids']))

    key = jax.random.PRNGKey(0)
    k_pos, k_z, k_params = jax.random.split(key, 3)

    bs = 2
    n_per_graph = 4
    num_nodes = bs * n_per_graph
    a_pos = jax.random.uniform(k_pos, (num_nodes, 3), jnp.float32, minval=0.0, maxval=2.0)
    z = jax.random.randint(k_z, (num_nodes,), 1, cfg['max_z'])
    batch_np = np.repeat(np.arange(bs), n_per_graph).astype(np.int32)

    # mesh grid positions (2x2x2 per graph), replicated per graph
    lin = np.array([0.5, 1.5], dtype=np.float32)
    grid_local = np.stack(np.meshgrid(lin, lin, lin, indexing='ij'), -1).reshape(-1, 3)
    m_pos_np = np.concatenate([grid_local for _ in range(bs)], axis=0)

    # synthetic graph construction (replaces radius_graph_determinstic / triplets / radius)
    pos_np = np.asarray(a_pos)
    src, dst = [], []
    for aa in range(num_nodes):
        for bb in range(num_nodes):
            if aa == bb or batch_np[aa] != batch_np[bb]:
                continue
            if np.linalg.norm(pos_np[aa] - pos_np[bb]) < cfg['cutoff']:
                src.append(aa)   # source j
                dst.append(bb)   # target i
    a2a_ei_np = np.array([src, dst], dtype=np.int32)
    E = a2a_ei_np.shape[1]

    # triplets: for each edge (j -> i), all edges (k -> j) with k != i
    t_i, t_j, t_k, t_kj, t_ji = [], [], [], [], []
    for e_ji in range(E):
        jj, ii = a2a_ei_np[0, e_ji], a2a_ei_np[1, e_ji]
        for e_kj in range(E):
            if a2a_ei_np[1, e_kj] != jj:
                continue
            kk = a2a_ei_np[0, e_kj]
            if kk == ii:
                continue
            t_i.append(ii); t_j.append(jj); t_k.append(kk)
            t_kj.append(e_kj); t_ji.append(e_ji)
    idx_i = np.array(t_i, dtype=np.int32)
    idx_j = np.array(t_j, dtype=np.int32)
    idx_k = np.array(t_k, dtype=np.int32)
    idx_kj = np.array(t_kj, dtype=np.int32)
    idx_ji = np.array(t_ji, dtype=np.int32)

    # atom -> mesh edges within grid_cutoff (same graph)
    a2m_src, a2m_dst = [], []
    Gtot = cfg['total_grids']
    for aa in range(num_nodes):
        gb = batch_np[aa]
        for mm in range(Gtot):
            mg = gb * Gtot + mm
            if np.linalg.norm(pos_np[aa] - m_pos_np[mg]) < cfg['grid_cutoff']:
                a2m_src.append(aa)
                a2m_dst.append(mg)
    a2m_ei_np = np.array([a2m_src, a2m_dst], dtype=np.int32)

    params = init_model(KeyGen(k_params), cfg)

    energy = model_forward(
        params, cfg,
        jnp.asarray(z, jnp.int32), a_pos, jnp.asarray(m_pos_np),
        jnp.asarray(batch_np),
        jnp.asarray(a2a_ei_np), jnp.asarray(a2m_ei_np),
        jnp.asarray(idx_i), jnp.asarray(idx_j), jnp.asarray(idx_k),
        jnp.asarray(idx_kj), jnp.asarray(idx_ji), bs)

    jax.block_until_ready(energy)
    assert energy.shape == (bs, 1)
    print("KERNEL_OK")
</pallas_src>

<mosaic_0001>
module attributes {stable_mosaic.version = 11 : i64} {
  func.func @_fused_linear_kernel(%arg0: i32, %arg1: memref<24x8xf32, #tpu.memory_space<vmem>>, %arg2: memref<8x32xbf16, #tpu.memory_space<vmem>>, %arg3: memref<1x32xf32, #tpu.memory_space<vmem>>, %arg4: memref<24x32xf32, #tpu.memory_space<vmem>>) attributes {dimension_semantics = [#tpu.dimension_semantics<parallel>], iteration_bounds = array<i64: 1>, scalar_prefetch = 0 : i64, scratch_operands = 0 : i64, tpu.core_type = #tpu.core_type<tc>, window_params = [{transform_indices = @transform_0, window_bounds = array<i64: 24, 8>}, {pipeline_mode = #tpu.pipeline_mode<synchronous>, transform_indices = @transform_1, window_bounds = array<i64: 8, 32>}, {pipeline_mode = #tpu.pipeline_mode<synchronous>, transform_indices = @transform_2, window_bounds = array<i64: 1, 32>}, {transform_indices = @transform_3, window_bounds = array<i64: 24, 32>}]} {
    %c0 = arith.constant 0 : index
    %c0_0 = arith.constant 0 : index
    %0 = vector.load %arg1[%c0, %c0_0] : memref<24x8xf32, #tpu.memory_space<vmem>>, vector<24x8xf32>
    %c0_1 = arith.constant 0 : index
    %c0_2 = arith.constant 0 : index
    %1 = vector.load %arg2[%c0_1, %c0_2] : memref<8x32xbf16, #tpu.memory_space<vmem>>, vector<8x32xbf16>
    %c0_3 = arith.constant 0 : index
    %c0_4 = arith.constant 0 : index
    %2 = vector.load %arg3[%c0_3, %c0_4] : memref<1x32xf32, #tpu.memory_space<vmem>>, vector<1x32xf32>
    %3 = arith.truncf %0 : vector<24x8xf32> to vector<24x8xbf16>
    %cst = arith.constant dense<0.000000e+00> : vector<24x32xf32>
    %4 = tpu.matmul %3, %1, %cst {dimension_numbers = #tpu.dot_dimension_numbers<[1], [0], [0], [1], [0, 0, 1, 1], [], []>} : vector<24x8xbf16>, vector<8x32xbf16>, vector<24x32xf32> -> vector<24x32xf32>
    %5 = vector.broadcast %2 : vector<1x32xf32> to vector<24x32xf32>
    %6 = arith.addf %4, %5 : vector<24x32xf32>
    %7 = arith.negf %6 : vector<24x32xf32>
    %8 = math.exp %7 : vector<24x32xf32>
    %cst_5 = arith.constant 1.000000e+00 : f32
    %9 = vector.broadcast %cst_5 : f32 to vector<24x32xf32>
    %10 = arith.addf %9, %8 : vector<24x32xf32>
    %11 = arith.divf %9, %10 : vector<24x32xf32>
    %12 = arith.mulf %6, %11 : vector<24x32xf32>
    %c0_6 = arith.constant 0 : index
    %c0_7 = arith.constant 0 : index
    %13 = vector.load %arg4[%c0_6, %c0_7] : memref<24x32xf32, #tpu.memory_space<vmem>>, vector<24x32xf32>
    tpu.vector_store %arg4[%c0_6, %c0_7], %12 {strides = array<i32>} : memref<24x32xf32, #tpu.memory_space<vmem>>, vector<24x32xf32>,
    return
  }
  func.func @transform_0(%arg0: i32) -> (i32, i32) {
    %c0_i32 = arith.constant 0 : i32
    %c0_i32_0 = arith.constant 0 : i32
    return %arg0, %c0_i32 : i32, i32
  }
  func.func @transform_1(%arg0: i32) -> (i32, i32) {
    %c0_i32 = arith.constant 0 : i32
    %c0_i32_0 = arith.constant 0 : i32
    %c0_i32_1 = arith.constant 0 : i32
    return %c0_i32, %c0_i32_0 : i32, i32
  }
  func.func @transform_2(%arg0: i32) -> (i32, i32) {
    %c0_i32 = arith.constant 0 : i32
    %c0_i32_0 = arith.constant 0 : i32
    %c0_i32_1 = arith.constant 0 : i32
    return %c0_i32, %c0_i32_0 : i32, i32
  }
  func.func @transform_3(%arg0: i32) -> (i32, i32) {
    %c0_i32 = arith.constant 0 : i32
    %c0_i32_0 = arith.constant 0 : i32
    return %arg0, %c0_i32 : i32, i32
  }
}

</mosaic_0001>

<bundles_post_ra>
// kernel: _fused_linear.1
= control target key start
LH: loop header
LB: loop body
LE: loop exit
PB: predicated region body
PF: predicated region fallthrough
CT: control target
= control target key end

     0   :  { %vm36_vm0 = vcmask 1043456   ;;  %vm29_vm1 = vcmask 64512   ;;  %s234_s0 = inlined_call_operand.vmem [shape: f32[24,8], index: 0, kind: input, shape index: {}]   ;;  %s235_s1 = inlined_call_operand.vmem [shape: bf16[8,32], index: 1, kind: input, shape index: {}]   ;;  %s236_s2 = inlined_call_operand.vmem [shape: f32[1,32], index: 2, kind: input, shape index: {}]   ;;  %s237_s3 = inlined_call_operand.hbm [shape: f32[24,32], index: 3, kind: output, shape index: {}]  }
   0x1   :  { %v19_v0 = vld [vmem:[%s235_s1] sm:$0xf]  ;;  %v17_v2 = vld [vmem:[%s234_s0 + $0x8] sm:$0xff]  ;;  %v18_v5 = vld [vmem:[%s234_s0 + $0x10] sm:$0xff] }
   0x2   :  { %v16_v1 = vld [vmem:[%s234_s0] sm:$0xff]  ;;  %144 = vmatprep.subr.msk.bf16.mxu0 %vm36_vm0, %v19_v0  ;;  %v38_v3 = vsel %vm36_vm0, %v19_v0, 0 }
   0x3   :  { %v21_v4 = vpack.c.bf16 %v17_v2, %v16_v1 }
   0x4   :  { %8 = vsyncpa [#allocation3], 0  ;;  %139 = vmatpush3.bf16.msra.mxu0 %v38_v3  ;;  %v22_v6 = vpack.c.bf16 %v18_v5, %v18_v5  ;;  %v129_v7 = vld [vmem:[%s236_s2] ss:$0 sm:$0xff]  ;;  %vm109_vm2 = vcmask 261120   ;;  %s184_s0 = smov [#allocation2]  }
   0x5   :  { %140 = vmatprep.mubr.msk.bf16.mxu0 %vm29_vm1, %v21_v4  ;;  %s118_s2 = sshll.u32 %s184_s0, 4  ;;  %s119_s2 = int_to_ptr.vmem [resolvable:$true] %s118_s2 }
   0x6   :  { %s160_s21 = scalar_lea.vmem %s119_s2, 384  ;;  %p165_p1 = scmp.lt.s32.totalorder %s119_s2, %s119_s2 }
   0x7   :  { %141 = vmatmul.mubr.msk.bf16.vlgmr.msra.gmra.mrb[0].mxu0 %vm29_vm1, %v22_v6  ;;  %p161_p0 = scmp.ne.s32.totalorder %s119_s2, %s160_s21  ;;  %p166_p2 = scmp.lt.s32.totalorder %s160_s21, %s160_s21 }
   0x9   :  { %p167_p3 = por %p166_p2, %p165_p1 }
   0xb   :  { %p168_p4 = pnand %p167_p3, %p161_p0 }
  0xda   :  { %v142_v8 = vpop.f32.mrb[0].mxu0 }
  0xdb   :  { %v83_v9 = vadd.f32 %v142_v8, %v129_v7  ;;  %v74_v10 = vpop.f32.mrb[1].mxu0 }
  0xdc   :  { %v75_v11 = vadd.f32 %v129_v7, %v74_v10  ;;  %v143_v12 = vpop.f32.mrb[2].mxu0 }
  0xdd   :  { %v134_v13 = vmul.f32 -1.442695, %v83_v9  ;;  %v77_v14 = vpop.f32.mrb[3].mxu0 }
  0xde   :  { %v132_v15 = vmul.f32 -1.442695, %v75_v11  ;;  %v78_v16 = vadd.f32 %v129_v7, %v77_v14 }
  0xdf   :  { %148 = vpow2.f32 %v134_v13 }
  0xe0   :  { %150 = vpow2.f32 %v132_v15  ;;  %v133_v17 = vmul.f32 -1.442695, %v78_v16 }
  0xe2   :  { %152 = vpow2.f32 %v133_v17 }
  0xe9   :  { %v149_v18 = vpop.eup %148 }
  0xea   :  { %v151_v19 = vpop.eup %150  ;;  %v99_v20 = vadd.f32 1.0, %v149_v18 }
  0xeb   :  { %v97_v21 = vadd.f32 1.0, %v151_v19 }
  0xec   :  { %v153_v22 = vpop.eup %152  ;;  %154 = vrcp.f32 %v99_v20 }
  0xed   :  { %156 = vrcp.f32 %v97_v21  ;;  %v98_v23 = vadd.f32 1.0, %v153_v22 }
  0xef   :  { %158 = vrcp.f32 %v98_v23 }
  0xf6   :  { %v155_v24 = vpop.eup %154 }
  0xf7   :  { %v157_v25 = vpop.eup %156  ;;  %v108_v26 = vmul.f32 %v155_v24, %v83_v9 }
  0xf8   :  { %v106_v27 = vmul.f32 %v157_v25, %v75_v11 }
  0xf9   :  { %v159_v28 = vpop.eup %158  ;;  %112 = vst.msk [vmem:[#allocation2 + $0x10] sm:$0xff] %vm109_vm2, %v108_v26 }
  0xfa   :  { %110 = vst.msk [vmem:[#allocation2] sm:$0xff] %vm109_vm2, %v106_v27  ;;  %v107_v29 = vmul.f32 %v159_v28, %v78_v16 }
  0xfc   :  { %111 = vst.msk [vmem:[#allocation2 + $0x8] sm:$0xff] %vm109_vm2, %v107_v29 }
  0xfd   :  { %171 = shalt.err (!%p168_p4)
}
  0xfe   :  { %s172_s24 = scalar_lea.hbm %s237_s3, 384 }
  0xff   :  { %p173_p5 = scmp.ne.s32.totalorder %s237_s3, %s172_s24  ;;  %p176_p6 = scmp.lt.u32.totalorder %s172_s24, %s237_s3 }
 0x101   :  { %p178_p7 = pnand %p176_p6, %p173_p5 }
 0x103   :  { %181 = shalt.err (!%p178_p7)
}
 0x104   :  { %s185_s29 = smov 128   ;;  %s186_s30 = smov 8  }
 0x105   :  { %124 = dma.vmem_to_hbm [thread:$0]  %s119_s2, 384, %s237_s3, [#allocation3], %s185_s29, %s185_s29, %s186_s30  }
 0x106   :  { %182 = dma.done.wait [#allocation3], 384  }
 0x107   :  { %183 = vsyncadd [#allocation3], 4294966912 }
 0x108   :  { %128 = vsyncpa [#allocation3], 1 }

</bundles_post_ra>
